<compile_context>
chip_gen: v5e
topology: v5e:2x2
jax: 0.10.0
libtpu: 0.0.40
codegen_flags: <defaults>
</compile_context>

<pallas_src>
import functools

import jax
import jax.numpy as jnp
from jax import lax
from jax.experimental import pallas as pl
from jax.experimental.pallas import tpu as pltpu

EPS = 1e-5  # nn.LayerNorm default

# Sublane packing granularity per element size (bytes -> rows per sublane tile).
_SUBLANE = {1: 32, 2: 16, 4: 8}


def _cdiv(a, b):
    return (a + b - 1) // b


def _round_up(a, b):
    return _cdiv(a, b) * b


def _vmem_config():
    """Per-generation (block byte budget, vmem_limit_bytes, max tile rows)."""
    try:
        info = pltpu.get_tpu_info()
        cap = getattr(info, "vmem_capacity_bytes", None)
    except Exception:
        cap = None
    if cap is not None and cap >= 100 * 1024 * 1024:
        # v5e / v6e: 128 MiB physical VMEM -> bigger streaming tiles are free
        # headroom (helps very wide C by keeping DMAs large).
        return 48 * 1024 * 1024, 96 * 1024 * 1024, 1024
    # v7x (64 MiB per TC) or unknown backend: stay conservative.
    return 16 * 1024 * 1024, 40 * 1024 * 1024, 512


def _choose_tile_rows(rows, lanes, dtype, budget, max_tr):
    itemsize = jnp.dtype(dtype).itemsize
    sub = _SUBLANE.get(itemsize, 8)
    # Per-step working set: double-buffered input + output blocks plus ~3 f32
    # temporaries of the tile inside the body.
    bytes_per_row = lanes * (4 * itemsize + 12)
    tr = budget // max(bytes_per_row, 1)
    tr = min(tr, max_tr)
    # Keep >= ~4 grid steps so v7x's two TensorCores both get balanced work.
    tr = min(tr, max(_round_up(_cdiv(rows, 4), sub), sub))
    tr = max((tr // sub) * sub, sub)
    if tr >= rows:
        return rows  # single full-extent block: no masking, no padding
    return tr


def _layer_norm_kernel(x_ref, gamma_ref, beta_ref, o_ref):
    # x_ref: (tile_rows, C) ; gamma/beta: (1, C) f32.  Two-pass statistics.
    x = x_ref[...].astype(jnp.float32)
    c_inv = jnp.float32(1.0 / x.shape[-1])
    mean = jnp.sum(x, axis=-1, keepdims=True) * c_inv
    xc = x - mean
    var = jnp.sum(xc * xc, axis=-1, keepdims=True) * c_inv
    inv = lax.rsqrt(var + EPS)
    o_ref[...] = (xc * inv * gamma_ref[...] + beta_ref[...]).astype(o_ref.dtype)


def _layer_norm_seg_kernel(x_ref, gamma_ref, beta_ref, s_ref, e_ref, o_ref, *, c):
    # Lane-dense repacked path: each kernel row holds k = L // c original rows
    # side by side along the lane axis (L = k * c >= 128).
    #   s_ref: (L, k) block-diagonal ones  -> per-segment lane sums (MXU)
    #   e_ref: (k, L) its transpose        -> broadcast segment stats back
    x = x_ref[...].astype(jnp.float32)
    c_inv = jnp.float32(1.0 / c)
    S = s_ref[...]
    E = e_ref[...]
    mean_seg = jnp.dot(x, S, preferred_element_type=jnp.float32) * c_inv
    mean_full = jnp.dot(mean_seg, E, preferred_element_type=jnp.float32)
    xc = x - mean_full
    var_seg = jnp.dot(xc * xc, S, preferred_element_type=jnp.float32) * c_inv
    inv_seg = lax.rsqrt(var_seg + EPS)
    inv_full = jnp.dot(inv_seg, E, preferred_element_type=jnp.float32)
    o_ref[...] = (xc * inv_full * gamma_ref[...] + beta_ref[...]).astype(o_ref.dtype)


@jax.jit
def layer_norm(x, gamma, beta):
    """x: (..., C) -> LayerNorm over last dim with affine gamma/beta of shape (C,)."""
    orig_shape = x.shape
    C = orig_shape[-1]
    x2 = x.reshape(-1, C)
    rows = x2.shape[0]

    budget, vmem_limit, max_tr = _vmem_config()

    # Hoist affine-parameter casts out of the kernel (done once, not per step).
    g2 = gamma.reshape(1, C).astype(jnp.float32)
    b2 = beta.reshape(1, C).astype(jnp.float32)

    k = 128 // C if (C < 128 and 128 % C == 0) else 1
    use_seg = k > 1 and rows % k == 0

    compiler_params = pltpu.CompilerParams(
        dimension_semantics=("parallel",),
        vmem_limit_bytes=vmem_limit,
    )

    if use_seg:
        L = k * C  # == 128, lane-dense output blocks
        rows_eff = rows // k
        x2 = x2.reshape(rows_eff, L)           # free row-major reshape
        g2 = jnp.tile(g2, (1, k))
        b2 = jnp.tile(b2, (1, k))
        seg_ids = jnp.arange(L, dtype=jnp.int32) // C
        S = (seg_ids[:, None] == jnp.arange(k, dtype=jnp.int32)[None, :]).astype(jnp.float32)
        E = S.T

        tile_rows = _choose_tile_rows(rows_eff, L, x.dtype, budget, max_tr)
        n_tiles = _cdiv(rows_eff, tile_rows)

        out = pl.pallas_call(
            functools.partial(_layer_norm_seg_kernel, c=C),
            out_shape=jax.ShapeDtypeStruct((rows_eff, L), x.dtype),
            grid_spec=pltpu.PrefetchScalarGridSpec(
                num_scalar_prefetch=0,
                grid=(n_tiles,),
                in_specs=[
                    pl.BlockSpec((tile_rows, L), lambda i: (i, 0)),
                    pl.BlockSpec((1, L), lambda i: (0, 0)),
                    pl.BlockSpec((1, L), lambda i: (0, 0)),
                    pl.BlockSpec((L, k), lambda i: (0, 0)),
                    pl.BlockSpec((k, L), lambda i: (0, 0)),
                ],
                out_specs=pl.BlockSpec((tile_rows, L), lambda i: (i, 0)),
            ),
            compiler_params=compiler_params,
        )(x2, g2, b2, S, E)
        return out.reshape(orig_shape)

    # General path (C >= 128, or small C with a row count that doesn't repack).
    tile_rows = _choose_tile_rows(rows, C, x.dtype, budget, max_tr)
    n_tiles = _cdiv(rows, tile_rows)

    out = pl.pallas_call(
        _layer_norm_kernel,
        out_shape=jax.ShapeDtypeStruct((rows, C), x.dtype),
        grid_spec=pltpu.PrefetchScalarGridSpec(
            num_scalar_prefetch=0,
            grid=(n_tiles,),
            in_specs=[
                pl.BlockSpec((tile_rows, C), lambda i: (i, 0)),
                pl.BlockSpec((1, C), lambda i: (0, 0)),
                pl.BlockSpec((1, C), lambda i: (0, 0)),
            ],
            out_specs=pl.BlockSpec((tile_rows, C), lambda i: (i, 0)),
        ),
        compiler_params=compiler_params,
    )(x2, g2, b2)
    return out.reshape(orig_shape)


def _reference_ln(x, gamma, beta):
    mean = jnp.mean(x, axis=-1, keepdims=True)
    var = jnp.mean((x - mean) ** 2, axis=-1, keepdims=True)
    return (x - mean) / jnp.sqrt(var + EPS) * gamma + beta


if __name__ == "__main__":
    # Small shapes consistent with Layer_Norm(shape) where shape = hidden = 32.
    B, N, C = 2, 8, 32  # (batch, seq, hidden), normalized over hidden
    key = jax.random.PRNGKey(0)
    kx, kg, kb, kx2, kx3 = jax.random.split(key, 5)

    x = jax.random.normal(kx, (B, N, C), dtype=jnp.float32)
    # PyTorch default init is ones/zeros; perturb so the affine path is exercised.
    gamma = 1.0 + 0.1 * jax.random.normal(kg, (C,), dtype=jnp.float32)
    beta = 0.1 * jax.random.normal(kb, (C,), dtype=jnp.float32)

    # Lane-dense repacked path (C=32 -> 128-lane blocks).
    y = layer_norm(x, gamma, beta)
    jax.block_until_ready(y)
    assert jnp.allclose(y, _reference_ln(x, gamma, beta), atol=1e-4, rtol=1e-4), \
        "mismatch vs reference (repacked path)"

    # Ragged row count with small C (falls back to the non-repacked path).
    x_odd = jax.random.normal(kx2, (3, 7, C), dtype=jnp.float32)
    y_odd = layer_norm(x_odd, gamma, beta)
    jax.block_until_ready(y_odd)
    assert jnp.allclose(y_odd, _reference_ln(x_odd, gamma, beta), atol=1e-4, rtol=1e-4), \
        "mismatch vs reference (fallback path)"

    # C >= 128 path with a ragged final row block (masked edge, no padding).
    C2 = 128
    gamma2 = 1.0 + 0.1 * jax.random.normal(kg, (C2,), dtype=jnp.float32)
    beta2 = 0.1 * jax.random.normal(kb, (C2,), dtype=jnp.float32)
    x_wide = jax.random.normal(kx3, (2, 5, C2), dtype=jnp.float32)
    y_wide = layer_norm(x_wide, gamma2, beta2)
    jax.block_until_ready(y_wide)
    assert jnp.allclose(y_wide, _reference_ln(x_wide, gamma2, beta2), atol=1e-4, rtol=1e-4), \
        "mismatch vs reference (wide / ragged-edge path)"

    print("KERNEL_OK")
</pallas_src>

<mosaic_0001>
module attributes {stable_mosaic.version = 11 : i64} {
  func.func @_layer_norm_seg_kernel(%arg0: i32, %arg1: memref<4x128xf32, #tpu.memory_space<vmem>>, %arg2: memref<1x128xf32, #tpu.memory_space<vmem>>, %arg3: memref<1x128xf32, #tpu.memory_space<vmem>>, %arg4: memref<128x4xf32, #tpu.memory_space<vmem>>, %arg5: memref<4x128xf32, #tpu.memory_space<vmem>>, %arg6: memref<4x128xf32, #tpu.memory_space<vmem>>) attributes {dimension_semantics = [#tpu.dimension_semantics<parallel>], iteration_bounds = array<i64: 1>, scalar_prefetch = 0 : i64, scratch_operands = 0 : i64, tpu.core_type = #tpu.core_type<tc>, window_params = [{transform_indices = @transform_0, window_bounds = array<i64: 4, 128>}, {pipeline_mode = #tpu.pipeline_mode<synchronous>, transform_indices = @transform_1, window_bounds = array<i64: 1, 128>}, {pipeline_mode = #tpu.pipeline_mode<synchronous>, transform_indices = @transform_2, window_bounds = array<i64: 1, 128>}, {pipeline_mode = #tpu.pipeline_mode<synchronous>, transform_indices = @transform_3, window_bounds = array<i64: 128, 4>}, {pipeline_mode = #tpu.pipeline_mode<synchronous>, transform_indices = @transform_4, window_bounds = array<i64: 4, 128>}, {transform_indices = @transform_5, window_bounds = array<i64: 4, 128>}]} {
    %c0 = arith.constant 0 : index
    %c0_0 = arith.constant 0 : index
    %0 = vector.load %arg1[%c0, %c0_0] : memref<4x128xf32, #tpu.memory_space<vmem>>, vector<4x128xf32>
    %c0_1 = arith.constant 0 : index
    %c0_2 = arith.constant 0 : index
    %1 = vector.load %arg4[%c0_1, %c0_2] : memref<128x4xf32, #tpu.memory_space<vmem>>, vector<128x4xf32>
    %c0_3 = arith.constant 0 : index
    %c0_4 = arith.constant 0 : index
    %2 = vector.load %arg5[%c0_3, %c0_4] : memref<4x128xf32, #tpu.memory_space<vmem>>, vector<4x128xf32>
    %cst = arith.constant dense<0.000000e+00> : vector<4x4xf32>
    %3 = tpu.matmul %0, %1, %cst {dimension_numbers = #tpu.dot_dimension_numbers<[1], [0], [0], [1], [0, 0, 1, 1], [], []>} : vector<4x128xf32>, vector<128x4xf32>, vector<4x4xf32> -> vector<4x4xf32>
    %cst_5 = arith.constant 3.125000e-02 : f32
    %4 = vector.broadcast %cst_5 : f32 to vector<4x4xf32>
    %5 = arith.mulf %3, %4 : vector<4x4xf32>
    %cst_6 = arith.constant dense<0.000000e+00> : vector<4x128xf32>
    %6 = tpu.matmul %5, %2, %cst_6 {dimension_numbers = #tpu.dot_dimension_numbers<[1], [0], [0], [1], [0, 0, 1, 1], [], []>} : vector<4x4xf32>, vector<4x128xf32>, vector<4x128xf32> -> vector<4x128xf32>
    %7 = arith.subf %0, %6 : vector<4x128xf32>
    %8 = arith.mulf %7, %7 : vector<4x128xf32>
    %cst_7 = arith.constant dense<0.000000e+00> : vector<4x4xf32>
    %9 = tpu.matmul %8, %1, %cst_7 {dimension_numbers = #tpu.dot_dimension_numbers<[1], [0], [0], [1], [0, 0, 1, 1], [], []>} : vector<4x128xf32>, vector<128x4xf32>, vector<4x4xf32> -> vector<4x4xf32>
    %cst_8 = arith.constant 3.125000e-02 : f32
    %10 = vector.broadcast %cst_8 : f32 to vector<4x4xf32>
    %11 = arith.mulf %9, %10 : vector<4x4xf32>
    %cst_9 = arith.constant 9.99999974E-6 : f32
    %12 = vector.broadcast %cst_9 : f32 to vector<4x4xf32>
    %13 = arith.addf %11, %12 : vector<4x4xf32>
    %14 = math.rsqrt %13 : vector<4x4xf32>
    %cst_10 = arith.constant dense<0.000000e+00> : vector<4x128xf32>
    %15 = tpu.matmul %14, %2, %cst_10 {dimension_numbers = #tpu.dot_dimension_numbers<[1], [0], [0], [1], [0, 0, 1, 1], [], []>} : vector<4x4xf32>, vector<4x128xf32>, vector<4x128xf32> -> vector<4x128xf32>
    %16 = arith.mulf %7, %15 : vector<4x128xf32>
    %c0_11 = arith.constant 0 : index
    %c0_12 = arith.constant 0 : index
    %17 = vector.load %arg2[%c0_11, %c0_12] : memref<1x128xf32, #tpu.memory_space<vmem>>, vector<1x128xf32>
    %18 = vector.broadcast %17 : vector<1x128xf32> to vector<4x128xf32>
    %19 = arith.mulf %16, %18 : vector<4x128xf32>
    %c0_13 = arith.constant 0 : index
    %c0_14 = arith.constant 0 : index
    %20 = vector.load %arg3[%c0_13, %c0_14] : memref<1x128xf32, #tpu.memory_space<vmem>>, vector<1x128xf32>
    %21 = vector.broadcast %20 : vector<1x128xf32> to vector<4x128xf32>
    %22 = arith.addf %19, %21 : vector<4x128xf32>
    %c0_15 = arith.constant 0 : index
    %c0_16 = arith.constant 0 : index
    %23 = vector.load %arg6[%c0_15, %c0_16] : memref<4x128xf32, #tpu.memory_space<vmem>>, vector<4x128xf32>
    tpu.vector_store %arg6[%c0_15, %c0_16], %22 {strides = array<i32>} : memref<4x128xf32, #tpu.memory_space<vmem>>, vector<4x128xf32>,
    return
  }
  func.func @transform_0(%arg0: i32) -> (i32, i32) {
    %c0_i32 = arith.constant 0 : i32
    %c0_i32_0 = arith.constant 0 : i32
    return %arg0, %c0_i32 : i32, i32
  }
  func.func @transform_1(%arg0: i32) -> (i32, i32) {
    %c0_i32 = arith.constant 0 : i32
    %c0_i32_0 = arith.constant 0 : i32
    %c0_i32_1 = arith.constant 0 : i32
    return %c0_i32, %c0_i32_0 : i32, i32
  }
  func.func @transform_2(%arg0: i32) -> (i32, i32) {
    %c0_i32 = arith.constant 0 : i32
    %c0_i32_0 = arith.constant 0 : i32
    %c0_i32_1 = arith.constant 0 : i32
    return %c0_i32, %c0_i32_0 : i32, i32
  }
  func.func @transform_3(%arg0: i32) -> (i32, i32) {
    %c0_i32 = arith.constant 0 : i32
    %c0_i32_0 = arith.constant 0 : i32
    %c0_i32_1 = arith.constant 0 : i32
    return %c0_i32, %c0_i32_0 : i32, i32
  }
  func.func @transform_4(%arg0: i32) -> (i32, i32) {
    %c0_i32 = arith.constant 0 : i32
    %c0_i32_0 = arith.constant 0 : i32
    %c0_i32_1 = arith.constant 0 : i32
    return %c0_i32, %c0_i32_0 : i32, i32
  }
  func.func @transform_5(%arg0: i32) -> (i32, i32) {
    %c0_i32 = arith.constant 0 : i32
    %c0_i32_0 = arith.constant 0 : i32
    return %arg0, %c0_i32 : i32, i32
  }
}

</mosaic_0001>

<bundles_post_ra>
// kernel: layer_norm.1
= control target key start
LH: loop header
LB: loop body
LE: loop exit
PB: predicated region body
PF: predicated region fallthrough
CT: control target
= control target key end

     0   :  { %vm63_vm0 = vcmask 1043456   ;;  %vm59_vm1 = vcmask 31744   ;;  %s263_s3 = inlined_call_operand.vmem [shape: f32[128,4], index: 3, kind: input, shape index: {}]   ;;  %s264_s0 = inlined_call_operand.vmem [shape: f32[4,128], index: 0, kind: input, shape index: {}]   ;;  %s265_s4 = inlined_call_operand.vmem [shape: f32[4,128], index: 4, kind: input, shape index: {}]   ;;  %s266_s1 = inlined_call_operand.vmem [shape: f32[1,128], index: 1, kind: input, shape index: {}]   ;;  %s267_s2 = inlined_call_operand.vmem [shape: f32[1,128], index: 2, kind: input, shape index: {}]   ;;  %s268_s5 = inlined_call_operand.vmem [shape: f32[4,128], index: 5, kind: output, shape index: {}]  }
   0x1   :  { %v36_v0 = vld [vmem:[%s263_s3 + $0x78] sm:$0xff]  ;;  %v35_v1 = vld [vmem:[%s263_s3 + $0x70] sm:$0xff]  ;;  %v34_v2 = vld [vmem:[%s263_s3 + $0x68] sm:$0xff] }
   0x2   :  { %38 = vmatpush.msra.mxu0 %v36_v0  ;;  %89 = vmatpush.msra.mxu2 %v36_v0  ;;  %v33_v3 = vld [vmem:[%s263_s3 + $0x60] sm:$0xff]  ;;  %v32_v4 = vld [vmem:[%s263_s3 + $0x58] sm:$0xff]  ;;  %v31_v5 = vld [vmem:[%s263_s3 + $0x50] sm:$0xff] }
   0x3   :  { %v30_v6 = vld [vmem:[%s263_s3 + $0x48] sm:$0xff]  ;;  %v29_v7 = vld [vmem:[%s263_s3 + $0x40] sm:$0xff]  ;;  %v28_v8 = vld [vmem:[%s263_s3 + $0x38] sm:$0xff] }
   0x4   :  { %39 = vmatpush.msra.mxu0 %v35_v1  ;;  %90 = vmatpush.msra.mxu2 %v35_v1  ;;  %v27_v9 = vld [vmem:[%s263_s3 + $0x30] sm:$0xff]  ;;  %v26_v10 = vld [vmem:[%s263_s3 + $0x28] sm:$0xff]  ;;  %v25_v11 = vld [vmem:[%s263_s3 + $0x20] sm:$0xff] }
   0x5   :  { %v24_v12 = vld [vmem:[%s263_s3 + $0x18] sm:$0xff]  ;;  %v23_v13 = vld [vmem:[%s263_s3 + $0x10] sm:$0xff]  ;;  %v22_v14 = vld [vmem:[%s263_s3 + $0x8] sm:$0xff] }
   0x6   :  { %40 = vmatpush.msra.mxu0 %v34_v2  ;;  %91 = vmatpush.msra.mxu2 %v34_v2  ;;  %v21_v15 = vld [vmem:[%s263_s3] sm:$0xff] }
   0x7   :  { %v20_v16 = vld [vmem:[%s264_s0] sm:$0xf] }
   0x8   :  { %41 = vmatpush.msra.mxu0 %v33_v3  ;;  %92 = vmatpush.msra.mxu2 %v33_v3  ;;  %v37_v17 = vld [vmem:[%s265_s4] sm:$0xf] }
   0x9   :  { %160 = vmatpush.msk.msra.mxu1 %vm63_vm0, %v37_v17  ;;  %162 = vmatpush.msk.msra.mxu3 %vm63_vm0, %v37_v17  ;;  %v164_v33 = vld [vmem:[%s266_s1] ss:$0 sm:$0xff] }
   0xa   :  { %42 = vmatpush.msra.mxu0 %v32_v4  ;;  %93 = vmatpush.msra.mxu2 %v32_v4  ;;  %v165_v36 = vld [vmem:[%s267_s2] ss:$0 sm:$0xff] }
   0xc   :  { %43 = vmatpush.msra.mxu0 %v31_v5  ;;  %94 = vmatpush.msra.mxu2 %v31_v5 }
   0xe   :  { %44 = vmatpush.msra.mxu0 %v30_v6  ;;  %95 = vmatpush.msra.mxu2 %v30_v6 }
  0x10   :  { %45 = vmatpush.msra.mxu0 %v29_v7  ;;  %96 = vmatpush.msra.mxu2 %v29_v7 }
  0x12   :  { %46 = vmatpush.msra.mxu0 %v28_v8  ;;  %97 = vmatpush.msra.mxu2 %v28_v8 }
  0x14   :  { %47 = vmatpush.msra.mxu0 %v27_v9  ;;  %98 = vmatpush.msra.mxu2 %v27_v9 }
  0x16   :  { %48 = vmatpush.msra.mxu0 %v26_v10  ;;  %99 = vmatpush.msra.mxu2 %v26_v10 }
  0x18   :  { %49 = vmatpush.msra.mxu0 %v25_v11  ;;  %100 = vmatpush.msra.mxu2 %v25_v11 }
  0x1a   :  { %50 = vmatpush.msra.mxu0 %v24_v12  ;;  %101 = vmatpush.msra.mxu2 %v24_v12 }
  0x1c   :  { %51 = vmatpush.msra.mxu0 %v23_v13  ;;  %102 = vmatpush.msra.mxu2 %v23_v13 }
  0x1e   :  { %52 = vmatpush.msra.mxu0 %v22_v14  ;;  %103 = vmatpush.msra.mxu2 %v22_v14 }
  0x20   :  { %53 = vmatpush.msra.mxu0 %v21_v15  ;;  %104 = vmatpush.msra.mxu2 %v21_v15 }
  0x21   :  { %54 = vmatmul.f32.vlgmr.msra.gmra.mxu0 %v20_v16 }
  0x9e   :  { %v55_v18 = vpop.f32.mrf.mxu0 }
  0x9f   :  { %v58_v19 = vmul.f32 0.03125, %v55_v18 }
  0xa1   :  { %161 = vmatmul.msk.f32.vlgmr.msra.gmra.mxu1 %vm59_vm1, %v58_v19 }
 0x11e   :  { %v84_v20 = vpop.f32.mrf.mxu1 }
 0x11f   :  { %v87_v21 = vsub.f32 %v20_v16, %v84_v20 }
 0x121   :  { %v88_v22 = vmul.f32 %v87_v21, %v87_v21 }
 0x123   :  { %105 = vmatmul.f32.vlgmr.msra.gmra.mxu2 %v88_v22 }
 0x1a6   :  { %v106_v23 = vpop.f32.mrf.mxu2 }
 0x1a7   :  { %v109_v24 = vmul.f32 0.03125, %v106_v23 }
 0x1a9   :  { %v110_v25 = vadd.f32 1e-05, %v109_v24 }
 0x1ab   :  { %166 = vrsqrt.f32 %v110_v25  ;;  %vm117_vm3 = vweird.f32 %v110_v25 }
 0x1b1   :  { %v167_v26 = vpop.eup %166 }
 0x1b2   :  { %v112_v27 = vmul.f32 %v167_v26, %v110_v25  ;;  %vm118_vm2 = vweird.f32 %v167_v26 }
 0x1b3   :  { %vm119_vm4 = vmor %vm117_vm3, %vm118_vm2 }
 0x1b4   :  { %v113_v28 = vmul.f32 %v167_v26, %v112_v27 }
 0x1b6   :  { %v114_v29 = vmul.f32 0.5, %v113_v28 }
 0x1b8   :  { %v115_v30 = vsub.f32 1.5, %v114_v29 }
 0x1ba   :  { %v116_v31 = vmul.f32 %v167_v26, %v115_v30 }
 0x1bc   :  { %v120_v32 = vsel %vm119_vm4, %v167_v26, %v116_v31 }
 0x1bd   :  { %163 = vmatmul.msk.f32.vlgmr.msra.gmra.mxu3 %vm59_vm1, %v120_v32 }
 0x240   :  { %v141_v34 = vpop.f32.mrf.mxu3 }
 0x241   :  { %v144_v35 = vmul.f32 %v141_v34, %v87_v21 }
 0x243   :  { %v149_v37 = vmul.f32 %v164_v33, %v144_v35 }
 0x245   :  { %v154_v38 = vadd.f32 %v165_v36, %v149_v37 }
 0x247   :  { %155 = vst [vmem:[%s268_s5] sm:$0xf] %v154_v38 }

</bundles_post_ra>
